<compile_context>
chip_gen: v6e
topology: v6e:2x2x1
jax: 0.10.0
libtpu: 0.0.40
codegen_flags: <defaults>
</compile_context>

<pallas_src>
import functools
import numpy as np

import jax
import jax.numpy as jnp
from jax.experimental import pallas as pl
from jax.experimental.pallas import tpu as pltpu

# ----------------------------------------------------------------------------
# Config (synthetic small swin_t-style backbone; feature channels match 'swin_t')
# ----------------------------------------------------------------------------
CFG = dict(
    embed_dim=96,
    heads=(3, 6, 12, 24),
    window=2,
    mlp_ratio=4,
    patch=4,
    fpn_dim=256,
)

MM_DTYPE = jnp.bfloat16              # MXU input dtype (weights pre-cast at init)
VMEM_LIMIT = 48 * 1024 * 1024        # < v7x 64 MiB physical; worst case ~30 MiB used
FULL_BUDGET = 20 * 1024 * 1024       # cap on the double-buffered full-block footprint
TILE_M, TILE_K, TILE_N = 256, 512, 512   # tiled fallback (never hit by this model)
LN_EPS = 1e-5


def _rup(x, m):
    return (x + m - 1) // m * m


# ----------------------------------------------------------------------------
# Pallas kernel 1: fused (LayerNorm ->) matmul (-> +bias -> act -> LN -> +res)
# Single-K-step path: no accumulator scratch, no pl.when, one dense store.
# ----------------------------------------------------------------------------
def _mm_kernel(has_ln, has_bias, has_lnout, has_res, act, eps):
    def kernel(*refs):
        idx = 0
        a_ref = refs[idx]; idx += 1
        b_ref = refs[idx]; idx += 1
        if has_ln:
            lnw_ref, lnb_ref = refs[idx], refs[idx + 1]; idx += 2
        if has_bias:
            bias_ref = refs[idx]; idx += 1
        if has_lnout:
            low_ref, lob_ref = refs[idx], refs[idx + 1]; idx += 2
        if has_res:
            res_ref = refs[idx]; idx += 1
        o_ref = refs[idx]

        a = a_ref[...]
        if has_ln:
            a = a.astype(jnp.float32)
            mu = jnp.mean(a, axis=-1, keepdims=True)
            xc = a - mu
            var = jnp.mean(xc * xc, axis=-1, keepdims=True)
            a = xc * jax.lax.rsqrt(var + eps) * lnw_ref[...] + lnb_ref[...]
        y = jnp.dot(a.astype(MM_DTYPE), b_ref[...],
                    preferred_element_type=jnp.float32)
        if has_bias:
            y = y + bias_ref[...]
        if act == 'gelu':
            # TODO(synk): torch nn.GELU defaults to the exact erf form; erf
            # lowering in Mosaic is not guaranteed, so the tanh approximation
            # is fused here instead.
            y = 0.5 * y * (1.0 + jnp.tanh(
                0.7978845608028654 * (y + 0.044715 * y * y * y)))
        elif act == 'relu':
            y = jnp.maximum(y, 0.0)
        if has_lnout:
            mu = jnp.mean(y, axis=-1, keepdims=True)
            yc = y - mu
            var = jnp.mean(yc * yc, axis=-1, keepdims=True)
            y = yc * jax.lax.rsqrt(var + eps) * low_ref[...] + lob_ref[...]
        if has_res:
            y = y + res_ref[...]
        o_ref[...] = y.astype(o_ref.dtype)

    return kernel


def _mm_kernel_tiled(has_bias, has_res, act):
    """K-accumulating fallback for problems too large for a single full block."""
    def kernel(*refs):
        idx = 0
        a_ref = refs[idx]; idx += 1
        b_ref = refs[idx]; idx += 1
        if has_bias:
            bias_ref = refs[idx]; idx += 1
        if has_res:
            res_ref = refs[idx]; idx += 1
        o_ref, acc_ref = refs[idx], refs[idx + 1]

        @pl.when(pl.program_id(2) == 0)
        def _():
            acc_ref[...] = jnp.zeros_like(acc_ref)

        acc_ref[...] += jnp.dot(a_ref[...].astype(MM_DTYPE), b_ref[...],
                                preferred_element_type=jnp.float32)

        @pl.when(pl.program_id(2) == pl.num_programs(2) - 1)
        def _():
            y = acc_ref[...]
            if has_bias:
                y = y + bias_ref[...]
            if act == 'gelu':
                y = 0.5 * y * (1.0 + jnp.tanh(
                    0.7978845608028654 * (y + 0.044715 * y * y * y)))
            elif act == 'relu':
                y = jnp.maximum(y, 0.0)
            if has_res:
                y = y + res_ref[...]
            o_ref[...] = y.astype(o_ref.dtype)

    return kernel


def pallas_matmul(a, b, bias=None, *, residual=None, act=None, ln=None,
                  ln_out=None, out_dtype=jnp.float32, eps=LN_EPS):
    """a: (M, K); b: (K, N) bf16 weights; bias: (N,); residual: (M, N);
    ln: (gamma, beta) over K applied to `a` rows (prologue);
    ln_out: (gamma, beta) over N applied to the result (epilogue)."""
    M, K = a.shape
    K2, N = b.shape
    assert K == K2

    foot = (M * K * a.dtype.itemsize + K * N * b.dtype.itemsize + M * N * 4
            + (M * N * 4 if residual is not None else 0) + 16 * (K + N))
    if 2 * foot <= FULL_BUDGET:
        # ---- single K step, full-array blocks; split rows when big enough so
        #      v7x's 2 TensorCores can share the grid (no effect on v5e/v6e) --
        bm = M // 2 if (M >= 128 and M % 16 == 0) else M
        in_specs = [pl.BlockSpec((bm, K), lambda i: (i, 0)),
                    pl.BlockSpec((K, N), lambda i: (0, 0))]
        args = [a, b]
        if ln is not None:
            args += [ln[0].reshape(1, K).astype(jnp.float32),
                     ln[1].reshape(1, K).astype(jnp.float32)]
            in_specs += [pl.BlockSpec((1, K), lambda i: (0, 0))] * 2
        if bias is not None:
            args.append(bias.reshape(1, N).astype(jnp.float32))
            in_specs.append(pl.BlockSpec((1, N), lambda i: (0, 0)))
        if ln_out is not None:
            args += [ln_out[0].reshape(1, N).astype(jnp.float32),
                     ln_out[1].reshape(1, N).astype(jnp.float32)]
            in_specs += [pl.BlockSpec((1, N), lambda i: (0, 0))] * 2
        if residual is not None:
            args.append(residual.astype(jnp.float32))
            in_specs.append(pl.BlockSpec((bm, N), lambda i: (i, 0)))

        kernel = _mm_kernel(ln is not None, bias is not None,
                            ln_out is not None, residual is not None, act, eps)
        return pl.pallas_call(
            kernel,
            out_shape=jax.ShapeDtypeStruct((M, N), out_dtype),
            grid_spec=pltpu.PrefetchScalarGridSpec(
                num_scalar_prefetch=0,
                grid=(M // bm,),
                in_specs=in_specs,
                out_specs=pl.BlockSpec((bm, N), lambda i: (i, 0)),
            ),
            compiler_params=pltpu.CompilerParams(
                dimension_semantics=("parallel",),
                vmem_limit_bytes=VMEM_LIMIT),
        )(*args)

    # ---- tiled K-accumulating fallback (VMEM-safe on v7x; unused by this model)
    assert ln is None and ln_out is None, "fused LayerNorm needs the full-block path"
    bm = min(TILE_M, _rup(M, 8))
    bk = min(TILE_K, _rup(K, 128))
    bn = min(TILE_N, _rup(N, 128))
    Mp, Kp, Np = _rup(M, bm), _rup(K, bk), _rup(N, bn)
    pa = jnp.pad(a, ((0, Mp - M), (0, Kp - K))) if (Mp, Kp) != (M, K) else a
    pb = jnp.pad(b, ((0, Kp - K), (0, Np - N))) if (Kp, Np) != (K, N) else b
    in_specs = [pl.BlockSpec((bm, bk), lambda i, j, k: (i, k)),
                pl.BlockSpec((bk, bn), lambda i, j, k: (k, j))]
    args = [pa, pb]
    if bias is not None:
        bb = bias.reshape(1, N).astype(jnp.float32)
        if Np != N:
            bb = jnp.pad(bb, ((0, 0), (0, Np - N)))
        in_specs.append(pl.BlockSpec((1, bn), lambda i, j, k: (0, j)))
        args.append(bb)
    if residual is not None:
        r = residual.astype(jnp.float32)
        if (Mp, Np) != (M, N):
            r = jnp.pad(r, ((0, Mp - M), (0, Np - N)))
        in_specs.append(pl.BlockSpec((bm, bn), lambda i, j, k: (i, j)))
        args.append(r)
    out = pl.pallas_call(
        _mm_kernel_tiled(bias is not None, residual is not None, act),
        out_shape=jax.ShapeDtypeStruct((Mp, Np), out_dtype),
        grid_spec=pltpu.PrefetchScalarGridSpec(
            num_scalar_prefetch=0,
            grid=(Mp // bm, Np // bn, Kp // bk),
            in_specs=in_specs,
            out_specs=pl.BlockSpec((bm, bn), lambda i, j, k: (i, j)),
            scratch_shapes=[pltpu.VMEM((bm, bn), jnp.float32)]),
        compiler_params=pltpu.CompilerParams(
            dimension_semantics=("parallel", "parallel", "arbitrary"),
            vmem_limit_bytes=VMEM_LIMIT),
    )(*args)
    return out[:M, :N] if (Mp, Np) != (M, N) else out


def linear(x, w, b=None, *, residual=None, act=None, ln=None, ln_out=None):
    """x: (..., Cin), w: (Cin, Cout) bf16."""
    shp = x.shape
    r = None if residual is None else residual.reshape(-1, w.shape[1])
    y = pallas_matmul(x.reshape(-1, shp[-1]), w, b, residual=r, act=act,
                      ln=ln, ln_out=ln_out)
    return y.reshape(shp[:-1] + (w.shape[1],))


# ----------------------------------------------------------------------------
# Pallas kernel 2: fully fused SwinTransformerBlock (shift=0, eval)
#   LN1+qkv -> window attention -> proj+residual -> LN2+fc1+GELU -> fc2+residual
# Rows are token-major within a window group (row = token*wbg + window) so the
# per-token q/k/v slices are contiguous; the head split is done with
# head-segment indicator matmuls, keeping every tensor lane-dense.
# ----------------------------------------------------------------------------
def _swin_block_kernel(tok_ref, qkvw_ref, qkvb_ref, ln1w_ref, ln1b_ref,
                       projw_ref, projb_ref, ln2w_ref, ln2b_ref,
                       fc1w_ref, fc1b_ref, fc2w_ref, fc2b_ref, bias_ref,
                       o_ref, *, heads, T, eps):
    Mb, C = tok_ref.shape
    wbg = Mb // T
    hd = C // heads
    scale = hd ** -0.5

    def ln(v, w, b):
        mu = jnp.mean(v, axis=-1, keepdims=True)
        vc = v - mu
        var = jnp.mean(vc * vc, axis=-1, keepdims=True)
        return vc * jax.lax.rsqrt(var + eps) * w + b

    x = tok_ref[...].astype(jnp.float32)                         # (Mb, C)

    # ---- LN1 fused into the qkv matmul ----
    qkv = jnp.dot(ln(x, ln1w_ref[...], ln1b_ref[...]).astype(MM_DTYPE),
                  qkvw_ref[...], preferred_element_type=jnp.float32)
    qkv = qkv + qkvb_ref[...]                                    # (Mb, 3C)

    # ---- window attention ----
    # head-segment indicators: seg[c, h] = [c // hd == h] (0/1, exact in bf16)
    seg = (jax.lax.broadcasted_iota(jnp.int32, (C, heads), 0) // hd ==
           jax.lax.broadcasted_iota(jnp.int32, (C, heads), 1)).astype(MM_DTYPE)
    segT = (jax.lax.broadcasted_iota(jnp.int32, (heads, C), 1) // hd ==
            jax.lax.broadcasted_iota(jnp.int32, (heads, C), 0)).astype(MM_DTYPE)

    q = [qkv[i * wbg:(i + 1) * wbg, 0:C] * scale for i in range(T)]
    k = [qkv[i * wbg:(i + 1) * wbg, C:2 * C] for i in range(T)]
    v = [qkv[i * wbg:(i + 1) * wbg, 2 * C:3 * C] for i in range(T)]

    # all T*T q_i*k_j products stacked -> ONE bf16 score dot with seg
    prod = jnp.concatenate([q[i] * k[j] for i in range(T) for j in range(T)],
                           axis=0)                               # (T*T*wbg, C)
    s = jnp.dot(prod.astype(MM_DTYPE), seg,
                preferred_element_type=jnp.float32) + bias_ref[...]

    # per-query softmax over the T key tokens (f32 stats, approx reciprocal)
    pw = []
    for i in range(T):
        si = [s[(i * T + j) * wbg:(i * T + j + 1) * wbg, :] for j in range(T)]
        m = si[0]
        for j in range(1, T):
            m = jnp.maximum(m, si[j])
        e = [jnp.exp(sj - m) for sj in si]
        l = e[0]
        for j in range(1, T):
            l = l + e[j]
        inv = pl.reciprocal(l, approx=True)
        pw += [ej * inv for ej in e]
    pw = jnp.concatenate(pw, axis=0)                             # (T*T*wbg, heads)

    # ONE output-weight dot expands per-head probs back to channel space
    wfull = jnp.dot(pw.astype(MM_DTYPE), segT,
                    preferred_element_type=jnp.float32)          # (T*T*wbg, C)
    outs = []
    for i in range(T):
        acc = wfull[(i * T) * wbg:(i * T + 1) * wbg, :] * v[0]
        for j in range(1, T):
            acc = acc + wfull[(i * T + j) * wbg:(i * T + j + 1) * wbg, :] * v[j]
        outs.append(acc)
    attn = jnp.concatenate(outs, axis=0)                         # (Mb, C)

    # ---- proj + first residual ----
    x1 = jnp.dot(attn.astype(MM_DTYPE), projw_ref[...],
                 preferred_element_type=jnp.float32) + projb_ref[...] + x

    # ---- LN2 + fc1 + GELU (tanh approx) + fc2 + second residual ----
    # TODO(synk): torch nn.GELU defaults to the exact erf form; tanh approx used.
    h = jnp.dot(ln(x1, ln2w_ref[...], ln2b_ref[...]).astype(MM_DTYPE),
                fc1w_ref[...], preferred_element_type=jnp.float32) + fc1b_ref[...]
    h = 0.5 * h * (1.0 + jnp.tanh(
        0.7978845608028654 * (h + 0.044715 * h * h * h)))
    out = jnp.dot(h.astype(MM_DTYPE), fc2w_ref[...],
                  preferred_element_type=jnp.float32) + fc2b_ref[...] + x1

    o_ref[...] = out.astype(o_ref.dtype)                         # one dense store


def window_partition_groups(x, ws, G):
    """(B,H,W,C) -> (G*T*wbg, C); rows grouped by window-group, token-major
    within each group (row = token*wbg + window)."""
    B, H, W, C = x.shape
    T = ws * ws
    xw = x.reshape(B, H // ws, ws, W // ws, ws, C).transpose(0, 1, 3, 2, 4, 5)
    xw = xw.reshape(B * (H // ws) * (W // ws), T, C)
    BW = xw.shape[0]
    wbg = BW // G
    xw = xw.reshape(G, wbg, T, C).transpose(0, 2, 1, 3)
    return xw.reshape(G * T * wbg, C)


def window_unpartition_groups(y, ws, B, H, W, C, G):
    T = ws * ws
    BW = B * (H // ws) * (W // ws)
    wbg = BW // G
    y = y.reshape(G, T, wbg, C).transpose(0, 2, 1, 3).reshape(BW, T, C)
    x = y.reshape(B, H // ws, W // ws, ws, ws, C).transpose(0, 1, 3, 2, 4, 5)
    return x.reshape(B, H, W, C)


def swin_block(x, p, heads, ws):
    """Whole SwinTransformerBlock as ONE pallas_call, weights resident in VMEM."""
    B, H, W, C = x.shape
    T = ws * ws
    BW = B * (H // ws) * (W // ws)

    # split windows into groups of <=256 rows so v7x's 2 TCs can share the grid
    G = 1
    while ((BW // G) * T > 256 and BW % (2 * G) == 0
           and (BW // (2 * G)) % 8 == 0):
        G *= 2
    wbg = BW // G
    Mb = wbg * T

    xw = window_partition_groups(x, ws, G)                       # (G*Mb, C) f32
    bias_exp = jnp.repeat(p['rel_bias'], wbg, axis=0)            # (T*T*wbg, heads)

    def vec(a, n):
        return a.reshape(1, n).astype(jnp.float32)

    def wspec(shape):
        return pl.BlockSpec(shape, lambda g: (0, 0))

    out = pl.pallas_call(
        functools.partial(_swin_block_kernel, heads=heads, T=T, eps=LN_EPS),
        out_shape=jax.ShapeDtypeStruct((G * Mb, C), jnp.float32),
        grid_spec=pltpu.PrefetchScalarGridSpec(
            num_scalar_prefetch=0,
            grid=(G,),
            in_specs=[pl.BlockSpec((Mb, C), lambda g: (g, 0)),   # tokens
                      wspec((C, 3 * C)), wspec((1, 3 * C)),      # qkv
                      wspec((1, C)), wspec((1, C)),              # ln1
                      wspec((C, C)), wspec((1, C)),              # proj
                      wspec((1, C)), wspec((1, C)),              # ln2
                      wspec((C, 4 * C)), wspec((1, 4 * C)),      # fc1
                      wspec((4 * C, C)), wspec((1, C)),          # fc2
                      wspec((T * T * wbg, heads))],              # rel bias (expanded)
            out_specs=pl.BlockSpec((Mb, C), lambda g: (g, 0)),
        ),
        compiler_params=pltpu.CompilerParams(
            dimension_semantics=("parallel",),
            vmem_limit_bytes=VMEM_LIMIT),
    )(xw, p['qkv_w'], vec(p['qkv_b'], 3 * C),
      vec(p['ln1_w'], C), vec(p['ln1_b'], C),
      p['proj_w'], vec(p['proj_b'], C),
      vec(p['ln2_w'], C), vec(p['ln2_b'], C),
      p['fc1_w'], vec(p['fc1_b'], 4 * C),
      p['fc2_w'], vec(p['fc2_b'], C), bias_exp)
    return window_unpartition_groups(out, ws, B, H, W, C, G)


# ----------------------------------------------------------------------------
# Swin body glue (patch embed, patch merging) -- all matmuls via pallas_matmul
# ----------------------------------------------------------------------------
def patch_embed(x_nchw, p):
    B, C, H, W = x_nchw.shape
    ps = CFG['patch']
    x = jnp.transpose(x_nchw, (0, 2, 3, 1))                      # NHWC
    Hp, Wp = H // ps, W // ps
    x = x.reshape(B, Hp, ps, Wp, ps, C).transpose(0, 1, 3, 2, 4, 5)
    x = x.reshape(B, Hp, Wp, ps * ps * C)                        # (kh, kw, c) order
    # 4x4/s4 conv as a matmul; the post-LayerNorm is fused as an output epilogue
    return linear(x, p['proj_w'], p['proj_b'], ln_out=(p['norm_w'], p['norm_b']))


def patch_merging(x, p):
    x0 = x[:, 0::2, 0::2, :]
    x1 = x[:, 1::2, 0::2, :]
    x2 = x[:, 0::2, 1::2, :]
    x3 = x[:, 1::2, 1::2, :]
    x = jnp.concatenate([x0, x1, x2, x3], axis=-1)               # (B, H/2, W/2, 4C)
    # LayerNorm fused into the bias-free Linear(4C, 2C) reduction matmul
    return linear(x, p['red_w'], ln=(p['norm_w'], p['norm_b']))


# ----------------------------------------------------------------------------
# FPN + LastLevelP6P7 (1x1 laterals and 3x3 convs via the fused Pallas matmul)
# ----------------------------------------------------------------------------
def conv2d_3x3(x, w, b, stride=1):
    """3x3 conv, pad=1, NHWC; weight (9*Cin, Cout) in (kh, kw, cin) order.
    im2col patches are built in XLA in bf16 and fed to the fused matmul.
    TODO(synk): a 9-tap accumulating K-grid with element-offset index maps
    would avoid materializing the 9x patches tensor; at these <=8x8 spatial
    sizes the patches stay <0.6 MiB so im2col is kept."""
    B, H, W, C = x.shape
    xp = jnp.pad(x, ((0, 0), (1, 1), (1, 1), (0, 0)))
    Ho = (H + 2 - 3) // stride + 1
    Wo = (W + 2 - 3) // stride + 1
    cols = []
    for kh in range(3):
        for kw in range(3):
            cols.append(xp[:, kh:kh + stride * Ho:stride,
                           kw:kw + stride * Wo:stride, :])
    patches = jnp.concatenate(cols, axis=-1).astype(MM_DTYPE)    # (B, Ho, Wo, 9C)
    y = pallas_matmul(patches.reshape(-1, 9 * C), w, b)
    return y.reshape(B, Ho, Wo, w.shape[1])


def fpn_forward(feats, p):
    names = ['feat_res3', 'feat_res4', 'feat_res5']
    xs = [feats[n] for n in names]                               # NHWC

    last_inner = linear(xs[2], p['inner'][2]['w'], p['inner'][2]['b'])     # 1x1
    results = [conv2d_3x3(last_inner, p['layer'][2]['w'], p['layer'][2]['b'])]
    for idx in (1, 0):
        up = jnp.repeat(jnp.repeat(last_inner, 2, axis=1), 2, axis=2)      # nearest 2x
        up = up[:, :xs[idx].shape[1], :xs[idx].shape[2], :]
        # lateral 1x1 conv with the top-down add fused as the matmul residual
        last_inner = linear(xs[idx], p['inner'][idx]['w'], p['inner'][idx]['b'],
                            residual=up)
        results.insert(0, conv2d_3x3(last_inner, p['layer'][idx]['w'],
                                     p['layer'][idx]['b']))

    # LastLevelP6P7(768, 256): use_P5 = (768 == 256) is False -> P6 from C5 input
    c5 = xs[2]
    p6 = conv2d_3x3(c5, p['p6_w'], p['p6_b'], stride=2)
    p7 = conv2d_3x3(jnp.maximum(p6, 0.0), p['p7_w'], p['p7_b'], stride=2)
    results.extend([p6, p7])
    return names + ['p6', 'p7'], results


# ----------------------------------------------------------------------------
# Full SwinSPBackbone forward (use_classifier=False, freeze_backbone: no-op)
# ----------------------------------------------------------------------------
def swin_sp_backbone_forward(params, x_nchw):
    ws = CFG['window']
    x = patch_embed(x_nchw, params['pe'])                        # features[0..1]
    x = swin_block(x, params['stage1'], CFG['heads'][0], ws)
    x = patch_merging(x, params['merge1'])
    x = swin_block(x, params['stage2'], CFG['heads'][1], ws)
    feat3 = x                                                    # 192 ch, stride 8
    x = patch_merging(x, params['merge2'])
    x = swin_block(x, params['stage3'], CFG['heads'][2], ws)
    feat4 = x                                                    # 384 ch, stride 16
    x = patch_merging(x, params['merge3'])
    x = swin_block(x, params['stage4'], CFG['heads'][3], ws)
    feat5 = x                                                    # 768 ch, stride 32

    feats = {'feat_res3': feat3, 'feat_res4': feat4, 'feat_res5': feat5}
    names, results = fpn_forward(feats, params['fpn'])
    # present outputs in PyTorch NCHW layout
    return {n: jnp.transpose(r, (0, 3, 1, 2)) for n, r in zip(names, results)}


# ----------------------------------------------------------------------------
# Deterministic parameter construction (matmul weights pre-cast to bf16 once)
# ----------------------------------------------------------------------------
def _relative_position_index(ws):
    coords = np.stack(np.meshgrid(np.arange(ws), np.arange(ws), indexing="ij"))
    coords_flat = coords.reshape(2, -1)
    rel = coords_flat[:, :, None] - coords_flat[:, None, :]
    rel = rel.transpose(1, 2, 0).copy()
    rel[:, :, 0] += ws - 1
    rel[:, :, 1] += ws - 1
    rel[:, :, 0] *= 2 * ws - 1
    return rel.sum(-1).astype(np.int32)                          # (T, T)


def init_params(key):
    keys = iter(jax.random.split(key, 256))
    f32 = jnp.float32

    def nrm(shape, scale=0.02, dtype=MM_DTYPE):
        return (jax.random.normal(next(keys), shape, f32) * scale).astype(dtype)

    def zeros(shape):
        return jnp.zeros(shape, f32)

    def ones(shape):
        return jnp.ones(shape, f32)

    def block_params(dim, heads, ws):
        hidden = dim * CFG['mlp_ratio']
        table = nrm(((2 * ws - 1) ** 2, heads), dtype=f32)
        idx = _relative_position_index(ws)
        rel_bias = table[idx.reshape(-1)]                        # (T*T, heads)
        return dict(
            ln1_w=ones((dim,)), ln1_b=zeros((dim,)),
            qkv_w=nrm((dim, 3 * dim)), qkv_b=zeros((3 * dim,)),
            proj_w=nrm((dim, dim)), proj_b=zeros((dim,)),
            ln2_w=ones((dim,)), ln2_b=zeros((dim,)),
            fc1_w=nrm((dim, hidden)), fc1_b=zeros((hidden,)),
            fc2_w=nrm((hidden, dim)), fc2_b=zeros((dim,)),
            rel_bias=rel_bias,
        )

    def merge_params(dim):
        return dict(norm_w=ones((4 * dim,)), norm_b=zeros((4 * dim,)),
                    red_w=nrm((4 * dim, 2 * dim)))

    ed, ws = CFG['embed_dim'], CFG['window']
    params = dict(
        pe=dict(proj_w=nrm((CFG['patch'] ** 2 * 3, ed)), proj_b=zeros((ed,)),
                norm_w=ones((ed,)), norm_b=zeros((ed,))),
        stage1=block_params(ed, CFG['heads'][0], ws),
        merge1=merge_params(ed),
        stage2=block_params(2 * ed, CFG['heads'][1], ws),
        merge2=merge_params(2 * ed),
        stage3=block_params(4 * ed, CFG['heads'][2], ws),
        merge3=merge_params(4 * ed),
        stage4=block_params(8 * ed, CFG['heads'][3], ws),
    )
    in_list = [2 * ed, 4 * ed, 8 * ed]                           # [192, 384, 768]
    fd = CFG['fpn_dim']
    params['fpn'] = dict(
        inner=[dict(w=nrm((c, fd)), b=zeros((fd,))) for c in in_list],
        layer=[dict(w=nrm((9 * fd, fd)), b=zeros((fd,))) for _ in in_list],
        p6_w=nrm((9 * in_list[-1], fd)), p6_b=zeros((fd,)),
        p7_w=nrm((9 * fd, fd)), p7_b=zeros((fd,)),
    )
    return params


# ----------------------------------------------------------------------------
# Pure-JAX references (sanity checks only)
# ----------------------------------------------------------------------------
def _ref_layernorm(v, w, b, eps=LN_EPS):
    mu = v.mean(-1, keepdims=True)
    var = ((v - mu) ** 2).mean(-1, keepdims=True)
    return (v - mu) * jax.lax.rsqrt(var + eps) * w + b


def window_partition(x, ws):
    B, H, W, C = x.shape
    x = x.reshape(B, H // ws, ws, W // ws, ws, C).transpose(0, 1, 3, 2, 4, 5)
    return x.reshape(B * (H // ws) * (W // ws), ws * ws, C)


def window_unpartition(xw, ws, B, H, W, C):
    x = xw.reshape(B, H // ws, W // ws, ws, ws, C).transpose(0, 1, 3, 2, 4, 5)
    return x.reshape(B, H, W, C)


def _ref_swin_block(x, p, heads, ws):
    B, H, W, C = x.shape
    hd = C // heads
    xw = window_partition(x, ws)
    BW, T, _ = xw.shape
    f32 = lambda a: a.astype(jnp.float32)
    xn = _ref_layernorm(xw, p['ln1_w'], p['ln1_b'])
    qkv = xn @ f32(p['qkv_w']) + p['qkv_b']
    q = qkv[..., :C].reshape(BW, T, heads, hd).transpose(0, 2, 1, 3) * hd ** -0.5
    k = qkv[..., C:2 * C].reshape(BW, T, heads, hd).transpose(0, 2, 1, 3)
    v = qkv[..., 2 * C:].reshape(BW, T, heads, hd).transpose(0, 2, 1, 3)
    s = jnp.einsum('bhtd,bhsd->bhts', q, k)
    s = s + p['rel_bias'].reshape(T, T, heads).transpose(2, 0, 1)[None]
    a = jax.nn.softmax(s, axis=-1)
    o = jnp.einsum('bhts,bhsd->bhtd', a, v).transpose(0, 2, 1, 3).reshape(BW, T, C)
    x1 = o @ f32(p['proj_w']) + p['proj_b'] + xw
    h = jax.nn.gelu(_ref_layernorm(x1, p['ln2_w'], p['ln2_b']) @ f32(p['fc1_w'])
                    + p['fc1_b'], approximate=True)
    x2 = h @ f32(p['fc2_w']) + p['fc2_b'] + x1
    return window_unpartition(x2, ws, B, H, W, C)


# ----------------------------------------------------------------------------
if __name__ == "__main__":
    key = jax.random.PRNGKey(0)
    pkey, xkey, k1, k2, k3, k4, k5 = jax.random.split(key, 7)
    params = init_params(pkey)

    # --- unit check 1: fused LN -> matmul -> bias -> GELU vs pure-JAX reference
    xa = jax.random.normal(k1, (64, 96), jnp.float32)
    wm = jax.random.normal(k2, (96, 128), jnp.float32) * 0.1
    bm = jax.random.normal(k3, (128,), jnp.float32) * 0.1
    g = 1.0 + 0.1 * jax.random.normal(k4, (96,), jnp.float32)
    bt = 0.1 * jax.random.normal(k5, (96,), jnp.float32)
    y = pallas_matmul(xa, wm.astype(MM_DTYPE), bm, ln=(g, bt), act='gelu')
    mu = jnp.mean(xa, axis=-1, keepdims=True)
    var = jnp.mean((xa - mu) ** 2, axis=-1, keepdims=True)
    xn = (xa - mu) * jax.lax.rsqrt(var + LN_EPS) * g + bt
    y_ref = jax.nn.gelu(xn @ wm.astype(MM_DTYPE).astype(jnp.float32) + bm,
                        approximate=True)
    assert bool(jnp.allclose(y, y_ref, rtol=5e-2, atol=5e-1)), "matmul check failed"

    # --- unit check 2: matmul with fused output-side LayerNorm (patch-embed style)
    g2 = 1.0 + 0.1 * jax.random.normal(k4, (128,), jnp.float32)
    b2 = 0.1 * jax.random.normal(k5, (128,), jnp.float32)
    y2 = pallas_matmul(xa, wm.astype(MM_DTYPE), bm, ln_out=(g2, b2))
    h_ref = xa @ wm.astype(MM_DTYPE).astype(jnp.float32) + bm
    mu2 = h_ref.mean(-1, keepdims=True)
    var2 = ((h_ref - mu2) ** 2).mean(-1, keepdims=True)
    y2_ref = (h_ref - mu2) * jax.lax.rsqrt(var2 + LN_EPS) * g2 + b2
    assert bool(jnp.allclose(y2, y2_ref, rtol=5e-2, atol=5e-2)), "ln_out check failed"

    # --- unit check 3: fused swin block vs pure-JAX reference (two stages)
    xb = jax.random.normal(k3, (2, 4, 4, 192), jnp.float32)
    yb = swin_block(xb, params['stage2'], CFG['heads'][1], CFG['window'])
    yb_ref = _ref_swin_block(xb, params['stage2'], CFG['heads'][1], CFG['window'])
    assert bool(jnp.allclose(yb, yb_ref, rtol=3e-2, atol=3e-2)), \
        "swin block (stage2) check failed"

    xc = jax.random.normal(k4, (2, 2, 2, 768), jnp.float32)
    yc = swin_block(xc, params['stage4'], CFG['heads'][3], CFG['window'])
    yc_ref = _ref_swin_block(xc, params['stage4'], CFG['heads'][3], CFG['window'])
    assert bool(jnp.allclose(yc, yc_ref, rtol=3e-2, atol=3e-2)), \
        "swin block (stage4) check failed"

    # --- full SwinSPBackbone forward: PyTorch NCHW in (2, 3, 64, 64), NCHW out
    x = jax.random.normal(xkey, (2, 3, 64, 64), jnp.float32)
    fwd = jax.jit(swin_sp_backbone_forward)
    out = jax.block_until_ready(fwd(params, x))

    assert out['feat_res3'].shape == (2, 256, 8, 8)
    assert out['feat_res4'].shape == (2, 256, 4, 4)
    assert out['feat_res5'].shape == (2, 256, 2, 2)
    assert out['p6'].shape == (2, 256, 1, 1)
    assert out['p7'].shape == (2, 256, 1, 1)
    for v in out.values():
        assert bool(jnp.all(jnp.isfinite(v)))

    print("KERNEL_OK")
</pallas_src>

<mosaic_0001>
module attributes {stable_mosaic.version = 11 : i64} {
  func.func @kernel(%arg0: i32, %arg1: memref<64x96xf32, #tpu.memory_space<vmem>>, %arg2: memref<96x128xbf16, #tpu.memory_space<vmem>>, %arg3: memref<1x96xf32, #tpu.memory_space<vmem>>, %arg4: memref<1x96xf32, #tpu.memory_space<vmem>>, %arg5: memref<1x128xf32, #tpu.memory_space<vmem>>, %arg6: memref<64x128xf32, #tpu.memory_space<vmem>>) attributes {dimension_semantics = [#tpu.dimension_semantics<parallel>], iteration_bounds = array<i64: 1>, scalar_prefetch = 0 : i64, scratch_operands = 0 : i64, tpu.core_type = #tpu.core_type<tc>, window_params = [{transform_indices = @transform_0, window_bounds = array<i64: 64, 96>}, {pipeline_mode = #tpu.pipeline_mode<synchronous>, transform_indices = @transform_1, window_bounds = array<i64: 96, 128>}, {pipeline_mode = #tpu.pipeline_mode<synchronous>, transform_indices = @transform_2, window_bounds = array<i64: 1, 96>}, {pipeline_mode = #tpu.pipeline_mode<synchronous>, transform_indices = @transform_3, window_bounds = array<i64: 1, 96>}, {pipeline_mode = #tpu.pipeline_mode<synchronous>, transform_indices = @transform_4, window_bounds = array<i64: 1, 128>}, {transform_indices = @transform_5, window_bounds = array<i64: 64, 128>}]} {
    %c0 = arith.constant 0 : index
    %c0_0 = arith.constant 0 : index
    %0 = vector.load %arg1[%c0, %c0_0] : memref<64x96xf32, #tpu.memory_space<vmem>>, vector<64x96xf32>
    %cst = arith.constant dense<0.000000e+00> : vector<64xf32>
    %1 = vector.multi_reduction <add>, %0, %cst [1] : vector<64x96xf32> to vector<64xf32>
    %2 = vector.shape_cast %1 : vector<64xf32> to vector<64x1xf32>
    %cst_1 = arith.constant 9.600000e+01 : f32
    %3 = vector.broadcast %cst_1 : f32 to vector<64x1xf32>
    %4 = arith.divf %2, %3 : vector<64x1xf32>
    %5 = vector.broadcast %4 : vector<64x1xf32> to vector<64x96xf32>
    %6 = arith.subf %0, %5 : vector<64x96xf32>
    %7 = arith.mulf %6, %6 : vector<64x96xf32>
    %cst_2 = arith.constant dense<0.000000e+00> : vector<64xf32>
    %8 = vector.multi_reduction <add>, %7, %cst_2 [1] : vector<64x96xf32> to vector<64xf32>
    %9 = vector.shape_cast %8 : vector<64xf32> to vector<64x1xf32>
    %cst_3 = arith.constant 9.600000e+01 : f32
    %10 = vector.broadcast %cst_3 : f32 to vector<64x1xf32>
    %11 = arith.divf %9, %10 : vector<64x1xf32>
    %cst_4 = arith.constant 9.99999974E-6 : f32
    %12 = vector.broadcast %cst_4 : f32 to vector<64x1xf32>
    %13 = arith.addf %11, %12 : vector<64x1xf32>
    %14 = math.rsqrt %13 : vector<64x1xf32>
    %15 = vector.broadcast %14 : vector<64x1xf32> to vector<64x96xf32>
    %16 = arith.mulf %6, %15 : vector<64x96xf32>
    %c0_5 = arith.constant 0 : index
    %c0_6 = arith.constant 0 : index
    %17 = vector.load %arg3[%c0_5, %c0_6] : memref<1x96xf32, #tpu.memory_space<vmem>>, vector<1x96xf32>
    %18 = vector.broadcast %17 : vector<1x96xf32> to vector<64x96xf32>
    %19 = arith.mulf %16, %18 : vector<64x96xf32>
    %c0_7 = arith.constant 0 : index
    %c0_8 = arith.constant 0 : index
    %20 = vector.load %arg4[%c0_7, %c0_8] : memref<1x96xf32, #tpu.memory_space<vmem>>, vector<1x96xf32>
    %21 = vector.broadcast %20 : vector<1x96xf32> to vector<64x96xf32>
    %22 = arith.addf %19, %21 : vector<64x96xf32>
    %23 = arith.truncf %22 : vector<64x96xf32> to vector<64x96xbf16>
    %c0_9 = arith.constant 0 : index
    %c0_10 = arith.constant 0 : index
    %24 = vector.load %arg2[%c0_9, %c0_10] : memref<96x128xbf16, #tpu.memory_space<vmem>>, vector<96x128xbf16>
    %cst_11 = arith.constant dense<0.000000e+00> : vector<64x128xf32>
    %25 = tpu.matmul %23, %24, %cst_11 {dimension_numbers = #tpu.dot_dimension_numbers<[1], [0], [0], [1], [0, 0, 1, 1], [], []>} : vector<64x96xbf16>, vector<96x128xbf16>, vector<64x128xf32> -> vector<64x128xf32>
    %c0_12 = arith.constant 0 : index
    %c0_13 = arith.constant 0 : index
    %26 = vector.load %arg5[%c0_12, %c0_13] : memref<1x128xf32, #tpu.memory_space<vmem>>, vector<1x128xf32>
    %27 = vector.broadcast %26 : vector<1x128xf32> to vector<64x128xf32>
    %28 = arith.addf %25, %27 : vector<64x128xf32>
    %cst_14 = arith.constant 5.000000e-01 : f32
    %29 = vector.broadcast %cst_14 : f32 to vector<64x128xf32>
    %30 = arith.mulf %29, %28 : vector<64x128xf32>
    %cst_15 = arith.constant 4.471500e-02 : f32
    %31 = vector.broadcast %cst_15 : f32 to vector<64x128xf32>
    %32 = arith.mulf %31, %28 : vector<64x128xf32>
    %33 = arith.mulf %32, %28 : vector<64x128xf32>
    %34 = arith.mulf %33, %28 : vector<64x128xf32>
    %35 = arith.addf %28, %34 : vector<64x128xf32>
    %cst_16 = arith.constant 0.797884583 : f32
    %36 = vector.broadcast %cst_16 : f32 to vector<64x128xf32>
    %37 = arith.mulf %36, %35 : vector<64x128xf32>
    %38 = math.tanh %37 : vector<64x128xf32>
    %cst_17 = arith.constant 1.000000e+00 : f32
    %39 = vector.broadcast %cst_17 : f32 to vector<64x128xf32>
    %40 = arith.addf %39, %38 : vector<64x128xf32>
    %41 = arith.mulf %30, %40 : vector<64x128xf32>
    %c0_18 = arith.constant 0 : index
    %c0_19 = arith.constant 0 : index
    %42 = vector.load %arg6[%c0_18, %c0_19] : memref<64x128xf32, #tpu.memory_space<vmem>>, vector<64x128xf32>
    tpu.vector_store %arg6[%c0_18, %c0_19], %41 {strides = array<i32>} : memref<64x128xf32, #tpu.memory_space<vmem>>, vector<64x128xf32>,
    return
  }
  func.func @transform_0(%arg0: i32) -> (i32, i32) {
    %c0_i32 = arith.constant 0 : i32
    %c0_i32_0 = arith.constant 0 : i32
    return %arg0, %c0_i32 : i32, i32
  }
  func.func @transform_1(%arg0: i32) -> (i32, i32) {
    %c0_i32 = arith.constant 0 : i32
    %c0_i32_0 = arith.constant 0 : i32
    %c0_i32_1 = arith.constant 0 : i32
    return %c0_i32, %c0_i32_0 : i32, i32
  }
  func.func @transform_2(%arg0: i32) -> (i32, i32) {
    %c0_i32 = arith.constant 0 : i32
    %c0_i32_0 = arith.constant 0 : i32
    %c0_i32_1 = arith.constant 0 : i32
    return %c0_i32, %c0_i32_0 : i32, i32
  }
  func.func @transform_3(%arg0: i32) -> (i32, i32) {
    %c0_i32 = arith.constant 0 : i32
    %c0_i32_0 = arith.constant 0 : i32
    %c0_i32_1 = arith.constant 0 : i32
    return %c0_i32, %c0_i32_0 : i32, i32
  }
  func.func @transform_4(%arg0: i32) -> (i32, i32) {
    %c0_i32 = arith.constant 0 : i32
    %c0_i32_0 = arith.constant 0 : i32
    %c0_i32_1 = arith.constant 0 : i32
    return %c0_i32, %c0_i32_0 : i32, i32
  }
  func.func @transform_5(%arg0: i32) -> (i32, i32) {
    %c0_i32 = arith.constant 0 : i32
    %c0_i32_0 = arith.constant 0 : i32
    return %arg0, %c0_i32 : i32, i32
  }
}

</mosaic_0001>

<bundles_post_ra>
// kernel: tpu_custom_call.1
= control target key start
LH: loop header
LB: loop body
LE: loop exit
PB: predicated region body
PF: predicated region fallthrough
CT: control target
= control target key end

     0   :  { %10 = vsyncpa [#allocation3], 0  ;;  %s757_s0 = inlined_call_operand.hbm [shape: f32[64,96], index: 0, kind: input, shape index: {}]   ;;  %s758_s1 = inlined_call_operand.hbm [shape: bf16[96,128], index: 1, kind: input, shape index: {}]   ;;  %s759_s2 = inlined_call_operand.vmem [shape: f32[1,96], index: 2, kind: input, shape index: {}]   ;;  %s760_s3 = inlined_call_operand.vmem [shape: f32[1,96], index: 3, kind: input, shape index: {}]   ;;  %s761_s4 = inlined_call_operand.vmem [shape: f32[1,128], index: 4, kind: input, shape index: {}]   ;;  %s762_s5 = inlined_call_operand.hbm [shape: f32[64,128], index: 5, kind: output, shape index: {}]  }
   0x1   :  { %11 = vsyncpa [#allocation6], 0 }
   0x2   :  { %12 = vsyncpa [#allocation4], 0  ;;  %s594_s18 = smov [#allocation2]  }
   0x3   :  { %s18_s19 = sshll.u32 %s594_s18, 4  ;;  %s19_s19 = int_to_ptr.vmem [resolvable:$true] %s18_s19 }
   0x4   :  { %s536_s20 = scalar_lea.vmem %s19_s19, 1024  ;;  %p541_p1 = scmp.lt.s32.totalorder %s19_s19, %s19_s19 }
   0x5   :  { %p537_p0 = scmp.ne.s32.totalorder %s19_s19, %s536_s20  ;;  %p542_p2 = scmp.lt.s32.totalorder %s536_s20, %s536_s20 }
   0x7   :  { %p543_p3 = por %p542_p2, %p541_p1 }
   0x9   :  { %p544_p4 = pnand %p543_p3, %p537_p0 }
   0xb   :  { %547 = shalt.err (!%p544_p4)
}
   0xc   :  { %s595_s21 = smov 128   ;;  %s596_s22 = smov 8  }
   0xd   :  { %24 = dma.hbm_to_vmem [thread:$0]  %s757_s0, 1024, %s19_s19, [#allocation3], %s595_s21, %s595_s21, %s596_s22  }
   0xe   :  { %s597_s25 = smov [#allocation5]  }
   0xf   :  { %s30_s26 = sshll.u32 %s597_s25, 4  ;;  %s31_s26 = int_to_ptr.vmem [resolvable:$true] %s30_s26 }
  0x10   :  { %s556_s27 = scalar_lea.vmem %s31_s26, 768  ;;  %p561_p6 = scmp.lt.s32.totalorder %s31_s26, %s31_s26 }
  0x11   :  { %p557_p5 = scmp.ne.s32.totalorder %s31_s26, %s556_s27  ;;  %p562_p7 = scmp.lt.s32.totalorder %s556_s27, %s556_s27 }
  0x13   :  { %p563_p8 = por %p562_p7, %p561_p6 }
  0x15   :  { %p564_p9 = pnand %p563_p8, %p557_p5 }
  0x17   :  { %567 = shalt.err (!%p564_p9)
}
  0x18   :  { %s598_s28 = smov 64   ;;  %s599_s29 = smov 4  }
  0x19   :  { %36 = dma.hbm_to_vmem [thread:$0]  %s758_s1, 768, %s31_s26, [#allocation6], %s598_s28, %s598_s28, %s599_s29  }
  0x1a   :  { %588 = dma.done.wait [#allocation3], 1024  }
  0x1b   :  { %589 = vsyncadd [#allocation3], 4294966272 }
  0x1c   :  { %590 = dma.done.wait [#allocation6], 768  }
  0x1d   :  { %591 = vsyncadd [#allocation6], 4294966528  ;;  %vm58_vm0 = vcmask 785408   ;;  %v50_v0 = vld [vmem:[#allocation2] sm:$0xff]  ;;  %v51_v2 = vld [vmem:[#allocation2 + $0x8] sm:$0xff] }
  0x1e   :  { %v54_v1 = vld [vmem:[#allocation2 + $0x20] sm:$0xff]  ;;  %v59_v3 = vsel %vm58_vm0, %v50_v0, 0.0  ;;  %v55_v5 = vld [vmem:[#allocation2 + $0x28] sm:$0xff]  ;;  %v62_v6 = vsel %vm58_vm0, %v51_v2, 0.0  ;;  %v52_v7 = vld [vmem:[#allocation2 + $0x10] sm:$0xff] }
  0x1f   :  { %v71_v4 = vsel %vm58_vm0, %v54_v1, 0.0  ;;  %60 = vadd.xlane.f32.xlu0 %v59_v3  ;;  %v74_v8 = vsel %vm58_vm0, %v55_v5, 0.0  ;;  %v53_v9 = vld [vmem:[#allocation2 + $0x18] sm:$0xff]  ;;  %v65_v10 = vsel %vm58_vm0, %v52_v7, 0.0  ;;  %v56_v12 = vld [vmem:[#allocation2 + $0x30] sm:$0xff]  ;;  %v490_v56 = vld [vmem:[#allocation5 + $0x28] sm:$0xff]  }
  0x20   :  { %72 = vadd.xlane.f32.xlu1 %v71_v4  ;;  %v68_v11 = vsel %vm58_vm0, %v53_v9, 0.0  ;;  %v57_v13 = vld [vmem:[#allocation2 + $0x38] sm:$0xff]  ;;  %v77_v14 = vsel %vm58_vm0, %v56_v12, 0.0  ;;  %451 = vmatprep.subr.bf16.mxu0 %v490_v56  ;;  %v491_v57 = vld [vmem:[#allocation5 + $0x20] sm:$0xff]   ;;  %v493_v59 = vld [vmem:[#allocation5 + $0x10] sm:$0xff]  }
  0x21   :  { %v80_v15 = vsel %vm58_vm0, %v57_v13, 0.0  ;;  %471 = vmatprep.subr.bf16.mxu1 %v490_v56  ;;  %452 = vmatpush3.bf16.msra.mxu0 %v490_v56  ;;  %v492_v58 = vld [vmem:[#allocation5 + $0x18] sm:$0xff]   ;;  %v494_v60 = vld [vmem:[#allocation5 + $0x8] sm:$0xff]   ;;  %v495_v61 = vld [vmem:[#allocation5] sm:$0xff]  }
  0x22   :  { %477 = vmatpush3.bf16.msra.mxu1 %v490_v56  ;;  %453 = vmatprep.subr.bf16.mxu0 %v491_v57 }
  0x23   :  { %63 = vadd.xlane.f32.xlu0 %v62_v6  ;;  %472 = vmatprep.subr.bf16.mxu1 %v491_v57 }
  0x24   :  { %75 = vadd.xlane.f32.xlu1 %v74_v8 }
  0x25   :  { %454 = vmatpush3.bf16.msra.mxu0 %v491_v57 }
  0x26   :  { %478 = vmatpush3.bf16.msra.mxu1 %v491_v57  ;;  %455 = vmatprep.subr.bf16.mxu0 %v492_v58 }
  0x27   :  { %66 = vadd.xlane.f32.xlu0 %v65_v10  ;;  %473 = vmatprep.subr.bf16.mxu1 %v492_v58 }
  0x28   :  { %69 = vadd.xlane.f32.xlu1 %v68_v11 }
  0x29   :  { %456 = vmatpush3.bf16.msra.mxu0 %v492_v58 }
  0x2a   :  { %479 = vmatpush3.bf16.msra.mxu1 %v492_v58  ;;  %457 = vmatprep.subr.bf16.mxu0 %v493_v59 }
  0x2b   :  { %78 = vadd.xlane.f32.xlu0 %v77_v14  ;;  %474 = vmatprep.subr.bf16.mxu1 %v493_v59 }
  0x2c   :  { %81 = vadd.xlane.f32.xlu1 %v80_v15 }
  0x2d   :  { %458 = vmatpush3.bf16.msra.mxu0 %v493_v59 }
  0x2e   :  { %480 = vmatpush3.bf16.msra.mxu1 %v493_v59  ;;  %459 = vmatprep.subr.bf16.mxu0 %v494_v60 }
  0x2f   :  { %475 = vmatprep.subr.bf16.mxu1 %v494_v60 }
  0x31   :  { %460 = vmatpush3.bf16.msra.mxu0 %v494_v60 }
  0x32   :  { %481 = vmatpush3.bf16.msra.mxu1 %v494_v60  ;;  %461 = vmatprep.subr.bf16.mxu0 %v495_v61 }
  0x33   :  { %476 = vmatprep.subr.bf16.mxu1 %v495_v61 }
  0x35   :  { %462 = vmatpush3.bf16.msra.mxu0 %v495_v61 }
  0x36   :  { %482 = vmatpush3.bf16.msra.mxu1 %v495_v61 }
  0xa8   :  { %v61_v16 = vpop.xlane.xlu0 %60 }
  0xa9   :  { %v73_v17 = vpop.xlane.xlu1 %72  ;;  %v84_v18 = vmul.f32 0.010416667, %v61_v16 }
  0xaa   :  { %v88_v19 = vmul.f32 0.010416667, %v73_v17 }
  0xab   :  { %v648_v20 = vsub.f32 %v50_v0, %v84_v18 }
  0xac   :  { %v650_v21 = vsub.f32 %v54_v1, %v88_v19  ;;  %v64_v22 = vpop.xlane.xlu0 %63 }
  0xad   :  { %v76_v23 = vpop.xlane.xlu1 %75  ;;  %v85_v24 = vmul.f32 0.010416667, %v64_v22  ;;  %v100_v26 = vmul.f32 %v648_v20, %v648_v20 }
  0xae   :  { %v89_v25 = vmul.f32 0.010416667, %v76_v23  ;;  %v104_v27 = vmul.f32 %v650_v21, %v650_v21 }
  0xaf   :  { %v656_v28 = vsub.f32 %v51_v2, %v85_v24  ;;  %v108_v30 = vsel %vm58_vm0, %v100_v26, 0.0  ;;  %v428_v26 = vld [vmem:[%s759_s2] ss:$0 sm:$0xff] }
  0xb0   :  { %v658_v29 = vsub.f32 %v55_v5, %v89_v25  ;;  %109 = vadd.xlane.f32.xlu0 %v108_v30  ;;  %v67_v31 = vpop.xlane.xlu0 %66  ;;  %v120_v33 = vsel %vm58_vm0, %v104_v27, 0.0 }
  0xb1   :  { %v70_v32 = vpop.xlane.xlu1 %69  ;;  %v86_v34 = vmul.f32 0.010416667, %v67_v31  ;;  %v101_v36 = vmul.f32 %v656_v28, %v656_v28 }
  0xb2   :  { %v87_v35 = vmul.f32 0.010416667, %v70_v32  ;;  %v105_v37 = vmul.f32 %v658_v29, %v658_v29 }
  0xb3   :  { %v666_v38 = vsub.f32 %v52_v7, %v86_v34  ;;  %v111_v40 = vsel %vm58_vm0, %v101_v36, 0.0 }
  0xb4   :  { %v668_v39 = vsub.f32 %v53_v9, %v87_v35  ;;  %121 = vadd.xlane.f32.xlu0 %v120_v33  ;;  %112 = vadd.xlane.f32.xlu1 %v111_v40  ;;  %v79_v41 = vpop.xlane.xlu0 %78  ;;  %v123_v43 = vsel %vm58_vm0, %v105_v37, 0.0  ;;  %v429_v33 = vld [vmem:[%s760_s3] ss:$0 sm:$0xff] }
  0xb5   :  { %v82_v42 = vpop.xlane.xlu1 %81  ;;  %v90_v44 = vmul.f32 0.010416667, %v79_v41  ;;  %v102_v46 = vmul.f32 %v666_v38, %v666_v38 }
  0xb6   :  { %v91_v45 = vmul.f32 0.010416667, %v82_v42  ;;  %v103_v47 = vmul.f32 %v668_v39, %v668_v39 }
  0xb7   :  { %v676_v48 = vsub.f32 %v56_v12, %v90_v44  ;;  %v114_v50 = vsel %vm58_vm0, %v102_v46, 0.0 }
  0xb8   :  { %v678_v49 = vsub.f32 %v57_v13, %v91_v45  ;;  %124 = vadd.xlane.f32.xlu1 %v123_v43  ;;  %115 = vadd.xlane.f32.xlu0 %v114_v50  ;;  %v117_v51 = vsel %vm58_vm0, %v103_v47, 0.0 }
  0xb9   :  { %v106_v52 = vmul.f32 %v676_v48, %v676_v48 }
  0xba   :  { %v107_v53 = vmul.f32 %v678_v49, %v678_v49 }
  0xbb   :  { %v126_v54 = vsel %vm58_vm0, %v106_v52, 0.0 }
  0xbc   :  { %118 = vadd.xlane.f32.xlu1 %v117_v51  ;;  %127 = vadd.xlane.f32.xlu0 %v126_v54  ;;  %v129_v55 = vsel %vm58_vm0, %v107_v53, 0.0 }
  0xc0   :  { %130 = vadd.xlane.f32.xlu1 %v129_v55 }
 0x139   :  { %v110_v62 = vpop.xlane.xlu0 %109 }
 0x13a   :  { %v132_v63 = vmul.f32 0.010416667, %v110_v62 }
 0x13c   :  { %v140_v0 = vadd.f32 1e-05, %v132_v63 }
 0x13d   :  { %v113_v1 = vpop.xlane.xlu1 %112  ;;  %v122_v2 = vpop.xlane.xlu0 %121 }
 0x13e   :  { %496 = vrsqrt.f32 %v140_v0  ;;  %v133_v3 = vmul.f32 0.010416667, %v113_v1  ;;  %v136_v4 = vmul.f32 0.010416667, %v122_v2 }
 0x140   :  { %v141_v5 = vadd.f32 1e-05, %v133_v3  ;;  %v144_v6 = vadd.f32 1e-05, %v136_v4 }
 0x141   :  { %v125_v7 = vpop.xlane.xlu1 %124  ;;  %v116_v8 = vpop.xlane.xlu0 %115 }
 0x142   :  { %498 = vrsqrt.f32 %v141_v5  ;;  %v137_v9 = vmul.f32 0.010416667, %v125_v7  ;;  %v134_v10 = vmul.f32 0.010416667, %v116_v8 }
 0x143   :  { %500 = vrsqrt.f32 %v144_v6 }
 0x144   :  { %v145_v11 = vadd.f32 1e-05, %v137_v9  ;;  %v142_v12 = vadd.f32 1e-05, %v134_v10 }
 0x145   :  { %v119_v13 = vpop.xlane.xlu1 %118  ;;  %v128_v14 = vpop.xlane.xlu0 %127 }
 0x146   :  { %502 = vrsqrt.f32 %v145_v11  ;;  %v135_v15 = vmul.f32 0.010416667, %v119_v13  ;;  %v138_v16 = vmul.f32 0.010416667, %v128_v14 }
 0x147   :  { %504 = vrsqrt.f32 %v142_v12 }
 0x148   :  { %v143_v17 = vadd.f32 1e-05, %v135_v15  ;;  %v146_v18 = vadd.f32 1e-05, %v138_v16 }
 0x149   :  { %v131_v19 = vpop.xlane.xlu1 %130 }
 0x14a   :  { %506 = vrsqrt.f32 %v143_v17  ;;  %v139_v22 = vmul.f32 0.010416667, %v131_v19 }
 0x14b   :  { %v497_v23 = vpop.eup %496  ;;  %508 = vrsqrt.f32 %v146_v18 }
 0x14c   :  { %v147_v24 = vadd.f32 1e-05, %v139_v22  ;;  %v156_v25 = vmul.f32 %v497_v23, %v648_v20 }
 0x14e   :  { %510 = vrsqrt.f32 %v147_v24  ;;  %v171_v32 = vmul.f32 %v428_v26, %v156_v25 }
 0x14f   :  { %v499_v27 = vpop.eup %498 }
 0x150   :  { %v501_v30 = vpop.eup %500  ;;  %v157_v31 = vmul.f32 %v499_v27, %v656_v28  ;;  %v186_v20 = vadd.f32 %v429_v33, %v171_v32 }
 0x151   :  { %v160_v34 = vmul.f32 %v501_v30, %v650_v21 }
 0x152   :  { %v172_v35 = vmul.f32 %v428_v26, %v157_v31 }
 0x153   :  { %v503_v36 = vpop.eup %502  ;;  %v175_v42 = vmul.f32 %v428_v26, %v160_v34 }
 0x154   :  { %v505_v37 = vpop.eup %504  ;;  %v187_v40 = vadd.f32 %v429_v33, %v172_v35  ;;  %v161_v41 = vmul.f32 %v503_v36, %v658_v29 }
 0x155   :  { %v158_v43 = vmul.f32 %v505_v37, %v666_v38  ;;  %v190_v47 = vadd.f32 %v429_v33, %v175_v42 }
 0x156   :  { %v194_v44 = vpack.c.bf16 %v187_v40, %v186_v20  ;;  %v176_v45 = vmul.f32 %v428_v26, %v161_v41 }
 0x157   :  { %v507_v28 = vpop.eup %506  ;;  %v173_v51 = vmul.f32 %v428_v26, %v158_v43 }
 0x158   :  { %v509_v46 = vpop.eup %508  ;;  %463 = vmatprep.mubr.msk.bf16.mxu0 %vm58_vm0, %v194_v44  ;;  %v191_v50 = vadd.f32 %v429_v33, %v176_v45  ;;  %v159_v21 = vmul.f32 %v507_v28, %v668_v39 }
 0x159   :  { %v162_v52 = vmul.f32 %v509_v46, %v676_v48  ;;  %v188_v29 = vadd.f32 %v429_v33, %v173_v51  ;;  %v430_v48 = vld [vmem:[%s761_s4] ss:$0 sm:$0xff]  ;;  %s600_s4 = smov [#allocation7]  }
 0x15a   :  { %v196_v53 = vpack.c.bf16 %v191_v50, %v190_v47  ;;  %v174_v54 = vmul.f32 %v428_v26, %v159_v21  ;;  %s415_s9 = sshll.u32 %s600_s4, 4  ;;  %s416_s9 = int_to_ptr.vmem [resolvable:$true] %s415_s9 }
 0x15b   :  { %v511_v55 = vpop.eup %510  ;;  %v177_v57 = vmul.f32 %v428_v26, %v162_v52  ;;  %s568_s10 = scalar_lea.vmem %s416_s9, 1024  ;;  %p573_p11 = scmp.lt.s32.totalorder %s416_s9, %s416_s9 }
 0x15c   :  { %467 = vmatprep.mubr.msk.bf16.mxu1 %vm58_vm0, %v196_v53  ;;  %v189_v38 = vadd.f32 %v429_v33, %v174_v54  ;;  %v163_v56 = vmul.f32 %v511_v55, %v678_v49  ;;  %p569_p10 = scmp.ne.s32.totalorder %s416_s9, %s568_s10  ;;  %p574_p12 = scmp.lt.s32.totalorder %s568_s10, %s568_s10 }
 0x15d   :  { %v192_v60 = vadd.f32 %v429_v33, %v177_v57 }
 0x15e   :  { %v195_v58 = vpack.c.bf16 %v189_v38, %v188_v29  ;;  %v178_v59 = vmul.f32 %v428_v26, %v163_v56  ;;  %p575_p13 = por %p574_p12, %p573_p11 }
 0x160   :  { %464 = vmatmul.mubr.msk.bf16.vlgmr.msra.gmra.mxu0 %vm58_vm0, %v195_v58  ;;  %v193_v61 = vadd.f32 %v429_v33, %v178_v59  ;;  %p576_p0 = pnand %p575_p13, %p569_p10 }
 0x162   :  { %v197_v39 = vpack.c.bf16 %v193_v61, %v192_v60 }
 0x164   :  { %468 = vmatmul.mubr.msk.bf16.vlgmr.msra.gmra.mxu1 %vm58_vm0, %v197_v39 }
 0x220   :  { %v465_v62 = vpop.f32.mrf.mxu0 }
 0x221   :  { %v308_v63 = vadd.f32 %v465_v62, %v430_v48 }
 0x222   :  { %v299_v0 = vpop.f32.mrf.mxu0 }
 0x223   :  { %v340_v1 = vmul.f32 0.044715, %v308_v63  ;;  %v709_v2 = vadd.f32 %v430_v48, %v299_v0  ;;  %v332_v57 = vmul.f32 0.5, %v308_v63 }
 0x224   :  { %v466_v49 = vpop.f32.mrf.mxu0  ;;  %v469_v3 = vpop.f32.mrf.mxu1 }
 0x225   :  { %v348_v4 = vmul.f32 %v340_v1, %v308_v63  ;;  %v338_v5 = vmul.f32 0.044715, %v709_v2  ;;  %v712_v6 = vadd.f32 %v466_v49, %v430_v48  ;;  %v714_v7 = vadd.f32 %v469_v3, %v430_v48 }
 0x226   :  { %v302_v8 = vpop.f32.mrf.mxu0  ;;  %v315_v9 = vpop.f32.mrf.mxu1  ;;  %v330_v61 = vmul.f32 0.5, %v709_v2 }
 0x227   :  { %v356_v10 = vmul.f32 %v348_v4, %v308_v63  ;;  %v346_v11 = vmul.f32 %v338_v5, %v709_v2  ;;  %v341_v12 = vmul.f32 0.044715, %v712_v6  ;;  %v344_v13 = vmul.f32 0.044715, %v714_v7 }
 0x228   :  { %v719_v14 = vadd.f32 %v430_v48, %v302_v8  ;;  %v721_v15 = vadd.f32 %v430_v48, %v315_v9  ;;  %v470_v16 = vpop.f32.mrf.mxu1  ;;  %v333_v1 = vmul.f32 0.5, %v712_v6  ;;  %v336_v3 = vmul.f32 0.5, %v714_v7 }
 0x229   :  { %v364_v17 = vadd.f32 %v356_v10, %v308_v63  ;;  %v354_v18 = vmul.f32 %v346_v11, %v709_v2  ;;  %v349_v19 = vmul.f32 %v341_v12, %v712_v6  ;;  %v725_v22 = vadd.f32 %v470_v16, %v430_v48 }
 0x22a   :  { %v352_v23 = vmul.f32 %v344_v13, %v714_v7  ;;  %v339_v24 = vmul.f32 0.044715, %v719_v14  ;;  %v342_v30 = vmul.f32 0.044715, %v721_v15  ;;  %v318_v31 = vpop.f32.mrf.mxu1  ;;  %v331_v10 = vmul.f32 0.5, %v719_v14 }
 0x22b   :  { %v372_v25 = vmul.f32 0.7978846, %v364_v17  ;;  %v362_v26 = vadd.f32 %v354_v18, %v709_v2  ;;  %v357_v27 = vmul.f32 %v349_v19, %v712_v6  ;;  %v345_v34 = vmul.f32 0.044715, %v725_v22 }
 0x22c   :  { %v360_v32 = vmul.f32 %v352_v23, %v714_v7  ;;  %v347_v33 = vmul.f32 %v339_v24, %v719_v14  ;;  %v350_v37 = vmul.f32 %v342_v30, %v721_v15  ;;  %v319_v42 = vadd.f32 %v430_v48, %v318_v31 }
 0x22d   :  { %512 = vtanh.f32 %v372_v25  ;;  %v370_v35 = vmul.f32 0.7978846, %v362_v26  ;;  %v365_v36 = vadd.f32 %v357_v27, %v712_v6  ;;  %v353_v41 = vmul.f32 %v345_v34, %v725_v22 }
 0x22e   :  { %v368_v20 = vadd.f32 %v360_v32, %v714_v7  ;;  %v355_v40 = vmul.f32 %v347_v33, %v719_v14  ;;  %v358_v44 = vmul.f32 %v350_v37, %v721_v15  ;;  %v343_v50 = vmul.f32 0.044715, %v319_v42 }
 0x22f   :  { %514 = vtanh.f32 %v370_v35  ;;  %v373_v43 = vmul.f32 0.7978846, %v365_v36  ;;  %v361_v46 = vmul.f32 %v353_v41, %v725_v22  ;;  %v334_v12 = vmul.f32 0.5, %v721_v15 }
 0x230   :  { %v376_v45 = vmul.f32 0.7978846, %v368_v20  ;;  %v363_v28 = vadd.f32 %v355_v40, %v719_v14  ;;  %v366_v47 = vadd.f32 %v358_v44, %v721_v15  ;;  %v351_v53 = vmul.f32 %v343_v50, %v319_v42 }
 0x231   :  { %516 = vtanh.f32 %v373_v43  ;;  %v369_v51 = vadd.f32 %v361_v46, %v725_v22  ;;  %v337_v6 = vmul.f32 0.5, %v725_v22  ;;  %v335_v14 = vmul.f32 0.5, %v319_v42 }
 0x232   :  { %518 = vtanh.f32 %v376_v45  ;;  %v371_v21 = vmul.f32 0.7978846, %v363_v28  ;;  %v374_v52 = vmul.f32 0.7978846, %v366_v47  ;;  %v359_v55 = vmul.f32 %v351_v53, %v319_v42 }
 0x233   :  { %v377_v54 = vmul.f32 0.7978846, %v369_v51 }
 0x234   :  { %520 = vtanh.f32 %v371_v21  ;;  %v367_v29 = vadd.f32 %v359_v55, %v319_v42 }
 0x235   :  { %522 = vtanh.f32 %v374_v52 }
 0x236   :  { %524 = vtanh.f32 %v377_v54  ;;  %v375_v38 = vmul.f32 0.7978846, %v367_v29 }
 0x238   :  { %526 = vtanh.f32 %v375_v38 }
 0x23a   :  { %v513_v56 = vpop.eup %512 }
 0x23b   :  { %v388_v58 = vadd.f32 1.0, %v513_v56 }
 0x23c   :  { %v515_v59 = vpop.eup %514 }
 0x23d   :  { %v396_v60 = vmul.f32 %v388_v58, %v332_v57  ;;  %v386_v39 = vadd.f32 1.0, %v515_v59 }
 0x23e   :  { %v517_v48 = vpop.eup %516 }
 0x23f   :  { %v519_v62 = vpop.eup %518  ;;  %404 = vst [vmem:[#allocation7 + $0x10] sm:$0xff] %v396_v60  ;;  %v394_v0 = vmul.f32 %v386_v39, %v330_v61  ;;  %v389_v49 = vadd.f32 1.0, %v517_v48 }
 0x240   :  { %v392_v4 = vadd.f32 1.0, %v519_v62 }
 0x241   :  { %v521_v5 = vpop.eup %520  ;;  %402 = vst [vmem:[#allocation7] sm:$0xff] %v394_v0  ;;  %v397_v63 = vmul.f32 %v389_v49, %v333_v1 }
 0x242   :  { %v523_v8 = vpop.eup %522  ;;  %v400_v9 = vmul.f32 %v392_v4, %v336_v3  ;;  %v387_v11 = vadd.f32 1.0, %v521_v5 }
 0x243   :  { %v525_v2 = vpop.eup %524  ;;  %405 = vst [vmem:[#allocation7 + $0x18] sm:$0xff] %v397_v63  ;;  %v390_v13 = vadd.f32 1.0, %v523_v8 }
 0x244   :  { %408 = vst [vmem:[#allocation7 + $0x30] sm:$0xff] %v400_v9  ;;  %v395_v16 = vmul.f32 %v387_v11, %v331_v10  ;;  %v393_v17 = vadd.f32 1.0, %v525_v2 }
 0x245   :  { %v398_v7 = vmul.f32 %v390_v13, %v334_v12  ;;  %v527_v19 = vpop.eup %526 }
 0x246   :  { %403 = vst [vmem:[#allocation7 + $0x8] sm:$0xff] %v395_v16  ;;  %v401_v18 = vmul.f32 %v393_v17, %v337_v6  ;;  %v391_v23 = vadd.f32 1.0, %v527_v19 }
 0x247   :  { %406 = vst [vmem:[#allocation7 + $0x20] sm:$0xff] %v398_v7 }
 0x248   :  { %409 = vst [vmem:[#allocation7 + $0x38] sm:$0xff] %v401_v18  ;;  %v399_v24 = vmul.f32 %v391_v23, %v335_v14 }
 0x24a   :  { %407 = vst [vmem:[#allocation7 + $0x28] sm:$0xff] %v399_v24 }
 0x24b   :  { %579 = shalt.err (!%p576_p0)
}
 0x24c   :  { %421 = dma.vmem_to_hbm [thread:$0]  %s416_s9, 1024, %s762_s5, [#allocation4], %s595_s21, %s595_s21, %s596_s22  }
 0x24d   :  { %592 = dma.done.wait [#allocation4], 1024  }
 0x24e   :  { %593 = vsyncadd [#allocation4], 4294966272 }
 0x24f   :  { %425 = vsyncpa [#allocation3], 1 }
 0x250   :  { %426 = vsyncpa [#allocation6], 1 }
 0x251   :  { %427 = vsyncpa [#allocation4], 1 }

</bundles_post_ra>
